<compile_context>
chip_gen: v6e
topology: v6e:2x2x1
jax: 0.10.0
libtpu: 0.0.40
codegen_flags: <defaults>
</compile_context>

<pallas_src>
import jax
import jax.numpy as jnp
from jax import lax
from jax.experimental import pallas as pl
from jax.experimental.pallas import tpu as pltpu

# ---- model hyper-parameters (small, consistent with the module) -------------
BATCH = 2
N_TOKENS = 8          # sequence length (number of tokens)
DIM = 32              # model dim
DEPTH = 2
HEADS = 2
DIM_HEAD = 16
INNER = HEADS * DIM_HEAD          # 32
MULT = 4.0
FF_HIDDEN = int(DIM * MULT)       # 128
FF_PROJ = 2 * FF_HIDDEN           # 256 (first FF linear width)
EPS = 1e-5                        # nn.LayerNorm default eps

# ---- packed-parameter slab layout --------------------------------------------
LW = 128                           # slab lane width
assert 3 * INNER <= LW and DIM <= LW and FF_HIDDEN <= LW
R_QKV = 0                          # rows [R_QKV, R_QKV+DIM)        : w_qkv  (DIM, 3*INNER)
R_OUT = R_QKV + DIM                # rows [R_OUT, R_OUT+INNER)      : w_out  (INNER, DIM)
R_FFA = R_OUT + INNER              # rows [R_FFA, R_FFA+DIM)        : w_ff1[:, :FF_HIDDEN]
R_FFG = R_FFA + DIM                # rows [R_FFG, R_FFG+DIM)        : w_ff1[:, FF_HIDDEN:]
R_FF2 = R_FFG + DIM                # rows [R_FF2, R_FF2+FF_HIDDEN)  : w_ff2  (FF_HIDDEN, DIM)
RW = R_FF2 + FF_HIDDEN             # = 256 for these sizes
VROWS = 8                          # ln1_g, ln1_b, b_out, ln2_g, ln2_b, b_ff1a, b_ff1g, b_ff2


# ---- in-kernel helpers -------------------------------------------------------
def _layernorm(x, g, b):
    mu = jnp.mean(x, axis=-1, keepdims=True)
    var = jnp.mean(jnp.square(x - mu), axis=-1, keepdims=True)
    return (x - mu) * lax.rsqrt(var + EPS) * g + b


def _gelu_exact(x):
    # torch.nn.functional.gelu default: exact erf form
    return 0.5 * x * (1.0 + lax.erf(x * (2.0 ** -0.5)))


# ---- fused transformer forward (single pallas_call over all layers) ----------
def transformer_forward(x, w_slab, v_slab, x_cont=None):
    """x: (batch, n, dim) float32 -> (batch, n, dim)."""
    if x_cont is not None:
        x = jnp.concatenate((x, x_cont), axis=1)
    B, N, Dm = x.shape
    BN = B * N
    depth = w_slab.shape[0]
    scale = N ** -0.5                      # Attention.forward: scale = a2 ** -0.5
    x2d = x.reshape(BN, Dm)

    def kernel(x_ref, w_ref, v_ref, o_ref, act_ref):
        layer = pl.program_id(0)

        @pl.when(layer == 0)
        def _copy_in():
            act_ref[...] = x_ref[...].astype(jnp.float32)

        xa = act_ref[...]                                   # (BN, D) running activation

        # per-layer packed params (2 slabs -> static slices, all lane-start 0)
        ln1_g = v_ref[0:1, 0:Dm]
        ln1_b = v_ref[1:2, 0:Dm]
        b_out = v_ref[2:3, 0:Dm]
        ln2_g = v_ref[3:4, 0:Dm]
        ln2_b = v_ref[4:5, 0:Dm]
        b_ffa = v_ref[5:6, 0:FF_HIDDEN]
        b_ffg = v_ref[6:7, 0:FF_HIDDEN]
        b_ff2 = v_ref[7:8, 0:Dm]

        w_qkv = w_ref[R_QKV:R_QKV + Dm, 0:3 * INNER]
        w_out = w_ref[R_OUT:R_OUT + INNER, 0:Dm]
        w_ffa = w_ref[R_FFA:R_FFA + Dm, 0:FF_HIDDEN]
        w_ffg = w_ref[R_FFG:R_FFG + Dm, 0:FF_HIDDEN]
        w_ff2 = w_ref[R_FF2:R_FF2 + FF_HIDDEN, 0:Dm]

        # ---- PreNorm(Residual(Attention)): out = Attn(LN(x)) + LN(x) ----
        h = _layernorm(xa, ln1_g, ln1_b)
        qkv = jnp.dot(h, w_qkv, preferred_element_type=jnp.float32)   # (BN, 3*INNER)

        batch_rows = []
        for b in range(B):
            r0 = b * N
            head_cols = []
            for hh in range(HEADS):
                c = hh * DIM_HEAD
                q = qkv[r0:r0 + N, c:c + DIM_HEAD]
                k = qkv[r0:r0 + N, INNER + c:INNER + c + DIM_HEAD]
                v = qkv[r0:r0 + N, 2 * INNER + c:2 * INNER + c + DIM_HEAD]
                # q @ k^T via dot_general (contract last dims) -> no transpose
                sim = lax.dot_general(q, k, (((1,), (1,)), ((), ())),
                                      preferred_element_type=jnp.float32) * scale
                sim = sim - jnp.max(sim, axis=-1, keepdims=True)
                p = jnp.exp(sim)
                inv = pl.reciprocal(jnp.sum(p, axis=-1, keepdims=True), approx=True)
                attn = p * inv
                head_cols.append(jnp.dot(attn, v, preferred_element_type=jnp.float32))
            batch_rows.append(jnp.concatenate(head_cols, axis=-1))     # (N, INNER)
        attn_out = jnp.concatenate(batch_rows, axis=0)                 # (BN, INNER)

        att = jnp.dot(attn_out, w_out, preferred_element_type=jnp.float32) + b_out
        y = att + h

        # ---- PreNorm(Residual(FeedForward/GEGLU)): out = FF(LN(y)) + LN(y) ----
        h2 = _layernorm(y, ln2_g, ln2_b)
        a = jnp.dot(h2, w_ffa, preferred_element_type=jnp.float32) + b_ffa
        g = jnp.dot(h2, w_ffg, preferred_element_type=jnp.float32) + b_ffg
        z = a * _gelu_exact(g)
        ffo = jnp.dot(z, w_ff2, preferred_element_type=jnp.float32) + b_ff2
        out_act = ffo + h2

        act_ref[...] = out_act
        o_ref[...] = out_act.astype(o_ref.dtype)   # HBM writeback only after last layer

    out2d = pl.pallas_call(
        kernel,
        out_shape=jax.ShapeDtypeStruct((BN, Dm), x.dtype),
        grid=(depth,),
        in_specs=[
            pl.BlockSpec((BN, Dm), lambda i: (0, 0)),           # x (read at layer 0)
            pl.BlockSpec((None, RW, LW), lambda i: (i, 0, 0)),  # weight slab for layer i
            pl.BlockSpec((None, VROWS, LW), lambda i: (i, 0, 0)),  # vector slab for layer i
        ],
        out_specs=pl.BlockSpec((BN, Dm), lambda i: (0, 0)),
        scratch_shapes=[pltpu.VMEM((BN, Dm), jnp.float32)],     # resident activation
        compiler_params=pltpu.CompilerParams(
            dimension_semantics=("arbitrary",)),
    )(x2d, w_slab, v_slab)
    return out2d.reshape(B, N, Dm)


# ---- pack per-layer params into 2 contiguous slabs ----------------------------
def pack_params(params):
    Ws, Vs = [], []
    for p in params:
        W = jnp.zeros((RW, LW), jnp.float32)
        W = W.at[R_QKV:R_QKV + DIM, 0:3 * INNER].set(p["w_qkv"])
        W = W.at[R_OUT:R_OUT + INNER, 0:DIM].set(p["w_out"])
        W = W.at[R_FFA:R_FFA + DIM, 0:FF_HIDDEN].set(p["w_ff1"][:, :FF_HIDDEN])
        W = W.at[R_FFG:R_FFG + DIM, 0:FF_HIDDEN].set(p["w_ff1"][:, FF_HIDDEN:])
        W = W.at[R_FF2:R_FF2 + FF_HIDDEN, 0:DIM].set(p["w_ff2"])

        V = jnp.zeros((VROWS, LW), jnp.float32)
        V = V.at[0, 0:DIM].set(p["ln1_g"])
        V = V.at[1, 0:DIM].set(p["ln1_b"])
        V = V.at[2, 0:DIM].set(p["b_out"])
        V = V.at[3, 0:DIM].set(p["ln2_g"])
        V = V.at[4, 0:DIM].set(p["ln2_b"])
        V = V.at[5, 0:FF_HIDDEN].set(p["b_ff1"][:FF_HIDDEN])
        V = V.at[6, 0:FF_HIDDEN].set(p["b_ff1"][FF_HIDDEN:])
        V = V.at[7, 0:DIM].set(p["b_ff2"])
        Ws.append(W)
        Vs.append(V)
    return jnp.stack(Ws), jnp.stack(Vs)


# ---- plain-JAX reference (mirrors the PyTorch module) -------------------------
def _ref_forward(x, params):
    B, N, Dm = x.shape

    def ln(v, g, b):
        mu = v.mean(-1, keepdims=True)
        var = ((v - mu) ** 2).mean(-1, keepdims=True)
        return (v - mu) / jnp.sqrt(var + EPS) * g + b

    cur = x
    for p in params:
        hn = ln(cur, p["ln1_g"], p["ln1_b"])
        qkv = hn @ p["w_qkv"]
        q, k, v = jnp.split(qkv, 3, axis=-1)

        def to_heads(t):
            return t.reshape(B, N, HEADS, DIM_HEAD).transpose(0, 2, 1, 3)

        q, k, v = map(to_heads, (q, k, v))
        sim = jnp.einsum('bhid,bhjd->bhij', q, k) * (N ** -0.5)
        attn = jax.nn.softmax(sim, axis=-1)
        o = jnp.einsum('bhij,bhjd->bhid', attn, v)
        o = o.transpose(0, 2, 1, 3).reshape(B, N, INNER)
        y = o @ p["w_out"] + p["b_out"] + hn          # Residual adds the NORMED input
        h2 = ln(y, p["ln2_g"], p["ln2_b"])
        ff = h2 @ p["w_ff1"] + p["b_ff1"]
        a, g = jnp.split(ff, 2, axis=-1)
        z = a * jax.nn.gelu(g, approximate=False)
        cur = z @ p["w_ff2"] + p["b_ff2"] + h2
    return cur


# ---- deterministic parameter init ---------------------------------------------
def init_params(key):
    params = []
    for _ in range(DEPTH):
        key, *ks = jax.random.split(key, 8)
        params.append({
            "ln1_g": jnp.ones((DIM,), jnp.float32),
            "ln1_b": jnp.zeros((DIM,), jnp.float32),
            # to_qkv: Linear(DIM, 3*INNER, bias=False), stored pre-transposed
            "w_qkv": 0.1 * jax.random.normal(ks[0], (DIM, 3 * INNER), jnp.float32),
            # to_out: Linear(INNER, DIM)
            "w_out": 0.1 * jax.random.normal(ks[1], (INNER, DIM), jnp.float32),
            "b_out": 0.01 * jax.random.normal(ks[2], (DIM,), jnp.float32),
            "ln2_g": jnp.ones((DIM,), jnp.float32),
            "ln2_b": jnp.zeros((DIM,), jnp.float32),
            # FF: Linear(DIM, 2*4*DIM) -> GEGLU -> Linear(4*DIM, DIM)
            "w_ff1": 0.1 * jax.random.normal(ks[3], (DIM, FF_PROJ), jnp.float32),
            "b_ff1": 0.01 * jax.random.normal(ks[4], (FF_PROJ,), jnp.float32),
            "w_ff2": 0.1 * jax.random.normal(ks[5], (FF_HIDDEN, DIM), jnp.float32),
            "b_ff2": 0.01 * jax.random.normal(ks[6], (DIM,), jnp.float32),
        })
    return params


if __name__ == "__main__":
    key = jax.random.PRNGKey(0)
    k_x, k_p = jax.random.split(key)
    x = jax.random.normal(k_x, (BATCH, N_TOKENS, DIM), jnp.float32)
    params = init_params(k_p)
    w_slab, v_slab = pack_params(params)

    out = transformer_forward(x, w_slab, v_slab)
    out = jax.block_until_ready(out)

    ref = _ref_forward(x, params)
    assert out.shape == (BATCH, N_TOKENS, DIM), out.shape
    max_diff = jnp.max(jnp.abs(out - ref))
    assert jnp.allclose(out, ref, rtol=2e-2, atol=2e-2), f"max diff {max_diff}"
    print("KERNEL_OK")
</pallas_src>

<mosaic_0001>
module attributes {stable_mosaic.version = 11 : i64} {
  func.func @kernel(%arg0: i32, %arg1: memref<16x32xf32, #tpu.memory_space<vmem>>, %arg2: memref<1x256x128xf32, #tpu.memory_space<vmem>>, %arg3: memref<1x8x128xf32, #tpu.memory_space<vmem>>, %arg4: memref<16x32xf32, #tpu.memory_space<vmem>>, %arg5: memref<16x32xf32, #tpu.memory_space<vmem>>) attributes {dimension_semantics = [#tpu.dimension_semantics<arbitrary>], iteration_bounds = array<i64: 2>, scalar_prefetch = 0 : i64, scratch_operands = 1 : i64, tpu.core_type = #tpu.core_type<tc>, window_params = [{pipeline_mode = #tpu.pipeline_mode<synchronous>, transform_indices = @transform_0, window_bounds = array<i64: 16, 32>}, {transform_indices = @transform_1, window_bounds = array<i64: 1, 256, 128>}, {transform_indices = @transform_2, window_bounds = array<i64: 1, 8, 128>}, {pipeline_mode = #tpu.pipeline_mode<synchronous>, transform_indices = @transform_3, window_bounds = array<i64: 16, 32>}]} {
    %c0_i32 = arith.constant 0 : i32
    %0 = arith.cmpi eq, %arg0, %c0_i32 : i32
    %1 = arith.extui %0 : i1 to i32
    %c0_i32_0 = arith.constant 0 : i32
    %2 = arith.cmpi ne, %1, %c0_i32_0 : i32
    scf.if %2 {
      %c0_71 = arith.constant 0 : index
      %c0_72 = arith.constant 0 : index
      %171 = vector.load %arg1[%c0_71, %c0_72] : memref<16x32xf32, #tpu.memory_space<vmem>>, vector<16x32xf32>
      %c0_73 = arith.constant 0 : index
      %c0_74 = arith.constant 0 : index
      %172 = vector.load %arg5[%c0_73, %c0_74] : memref<16x32xf32, #tpu.memory_space<vmem>>, vector<16x32xf32>
      tpu.vector_store %arg5[%c0_73, %c0_74], %171 {strides = array<i32>} : memref<16x32xf32, #tpu.memory_space<vmem>>, vector<16x32xf32>,
    } else {
    }
    %c0 = arith.constant 0 : index
    %c0_1 = arith.constant 0 : index
    %3 = vector.load %arg5[%c0, %c0_1] : memref<16x32xf32, #tpu.memory_space<vmem>>, vector<16x32xf32>
    %c0_2 = arith.constant 0 : index
    %c0_3 = arith.constant 0 : index
    %c0_4 = arith.constant 0 : index
    %4 = vector.load %arg3[%c0_2, %c0_3, %c0_4] : memref<1x8x128xf32, #tpu.memory_space<vmem>>, vector<1x1x32xf32>
    %5 = vector.shape_cast %4 : vector<1x1x32xf32> to vector<1x32xf32>
    %c0_5 = arith.constant 0 : index
    %c1 = arith.constant 1 : index
    %c0_6 = arith.constant 0 : index
    %6 = vector.load %arg3[%c0_5, %c1, %c0_6] : memref<1x8x128xf32, #tpu.memory_space<vmem>>, vector<1x1x32xf32>
    %7 = vector.shape_cast %6 : vector<1x1x32xf32> to vector<1x32xf32>
    %c0_7 = arith.constant 0 : index
    %c2 = arith.constant 2 : index
    %c0_8 = arith.constant 0 : index
    %8 = vector.load %arg3[%c0_7, %c2, %c0_8] : memref<1x8x128xf32, #tpu.memory_space<vmem>>, vector<1x1x32xf32>
    %9 = vector.shape_cast %8 : vector<1x1x32xf32> to vector<1x32xf32>
    %c0_9 = arith.constant 0 : index
    %c3 = arith.constant 3 : index
    %c0_10 = arith.constant 0 : index
    %10 = vector.load %arg3[%c0_9, %c3, %c0_10] : memref<1x8x128xf32, #tpu.memory_space<vmem>>, vector<1x1x32xf32>
    %11 = vector.shape_cast %10 : vector<1x1x32xf32> to vector<1x32xf32>
    %c0_11 = arith.constant 0 : index
    %c4 = arith.constant 4 : index
    %c0_12 = arith.constant 0 : index
    %12 = vector.load %arg3[%c0_11, %c4, %c0_12] : memref<1x8x128xf32, #tpu.memory_space<vmem>>, vector<1x1x32xf32>
    %13 = vector.shape_cast %12 : vector<1x1x32xf32> to vector<1x32xf32>
    %c0_13 = arith.constant 0 : index
    %c5 = arith.constant 5 : index
    %c0_14 = arith.constant 0 : index
    %14 = vector.load %arg3[%c0_13, %c5, %c0_14] : memref<1x8x128xf32, #tpu.memory_space<vmem>>, vector<1x1x128xf32>
    %15 = vector.shape_cast %14 : vector<1x1x128xf32> to vector<1x128xf32>
    %c0_15 = arith.constant 0 : index
    %c6 = arith.constant 6 : index
    %c0_16 = arith.constant 0 : index
    %16 = vector.load %arg3[%c0_15, %c6, %c0_16] : memref<1x8x128xf32, #tpu.memory_space<vmem>>, vector<1x1x128xf32>
    %17 = vector.shape_cast %16 : vector<1x1x128xf32> to vector<1x128xf32>
    %c0_17 = arith.constant 0 : index
    %c7 = arith.constant 7 : index
    %c0_18 = arith.constant 0 : index
    %18 = vector.load %arg3[%c0_17, %c7, %c0_18] : memref<1x8x128xf32, #tpu.memory_space<vmem>>, vector<1x1x32xf32>
    %19 = vector.shape_cast %18 : vector<1x1x32xf32> to vector<1x32xf32>
    %c0_19 = arith.constant 0 : index
    %c0_20 = arith.constant 0 : index
    %c0_21 = arith.constant 0 : index
    %20 = vector.load %arg2[%c0_19, %c0_20, %c0_21] : memref<1x256x128xf32, #tpu.memory_space<vmem>>, vector<1x32x96xf32>
    %21 = vector.shape_cast %20 : vector<1x32x96xf32> to vector<32x96xf32>
    %c0_22 = arith.constant 0 : index
    %c32 = arith.constant 32 : index
    %c0_23 = arith.constant 0 : index
    %22 = vector.load %arg2[%c0_22, %c32, %c0_23] : memref<1x256x128xf32, #tpu.memory_space<vmem>>, vector<1x32x32xf32>
    %23 = vector.shape_cast %22 : vector<1x32x32xf32> to vector<32x32xf32>
    %c0_24 = arith.constant 0 : index
    %c64 = arith.constant 64 : index
    %c0_25 = arith.constant 0 : index
    %24 = vector.load %arg2[%c0_24, %c64, %c0_25] : memref<1x256x128xf32, #tpu.memory_space<vmem>>, vector<1x32x128xf32>
    %25 = vector.shape_cast %24 : vector<1x32x128xf32> to vector<32x128xf32>
    %c0_26 = arith.constant 0 : index
    %c96 = arith.constant 96 : index
    %c0_27 = arith.constant 0 : index
    %26 = vector.load %arg2[%c0_26, %c96, %c0_27] : memref<1x256x128xf32, #tpu.memory_space<vmem>>, vector<1x32x128xf32>
    %27 = vector.shape_cast %26 : vector<1x32x128xf32> to vector<32x128xf32>
    %c0_28 = arith.constant 0 : index
    %c128 = arith.constant 128 : index
    %c0_29 = arith.constant 0 : index
    %28 = vector.load %arg2[%c0_28, %c128, %c0_29] : memref<1x256x128xf32, #tpu.memory_space<vmem>>, vector<1x128x32xf32>
    %29 = vector.shape_cast %28 : vector<1x128x32xf32> to vector<128x32xf32>
    %cst = arith.constant dense<0.000000e+00> : vector<16xf32>
    %30 = vector.multi_reduction <add>, %3, %cst [1] : vector<16x32xf32> to vector<16xf32>
    %31 = vector.shape_cast %30 : vector<16xf32> to vector<16x1xf32>
    %cst_30 = arith.constant 3.200000e+01 : f32
    %32 = vector.broadcast %cst_30 : f32 to vector<16x1xf32>
    %33 = arith.divf %31, %32 : vector<16x1xf32>
    %34 = vector.broadcast %33 : vector<16x1xf32> to vector<16x32xf32>
    %35 = arith.subf %3, %34 : vector<16x32xf32>
    %36 = arith.mulf %35, %35 : vector<16x32xf32>
    %cst_31 = arith.constant dense<0.000000e+00> : vector<16xf32>
    %37 = vector.multi_reduction <add>, %36, %cst_31 [1] : vector<16x32xf32> to vector<16xf32>
    %38 = vector.shape_cast %37 : vector<16xf32> to vector<16x1xf32>
    %cst_32 = arith.constant 3.200000e+01 : f32
    %39 = vector.broadcast %cst_32 : f32 to vector<16x1xf32>
    %40 = arith.divf %38, %39 : vector<16x1xf32>
    %41 = vector.broadcast %33 : vector<16x1xf32> to vector<16x32xf32>
    %42 = arith.subf %3, %41 : vector<16x32xf32>
    %cst_33 = arith.constant 9.99999974E-6 : f32
    %43 = vector.broadcast %cst_33 : f32 to vector<16x1xf32>
    %44 = arith.addf %40, %43 : vector<16x1xf32>
    %45 = math.rsqrt %44 : vector<16x1xf32>
    %46 = vector.broadcast %45 : vector<16x1xf32> to vector<16x32xf32>
    %47 = arith.mulf %42, %46 : vector<16x32xf32>
    %48 = vector.broadcast %5 : vector<1x32xf32> to vector<16x32xf32>
    %49 = arith.mulf %47, %48 : vector<16x32xf32>
    %50 = vector.broadcast %7 : vector<1x32xf32> to vector<16x32xf32>
    %51 = arith.addf %49, %50 : vector<16x32xf32>
    %cst_34 = arith.constant dense<0.000000e+00> : vector<16x96xf32>
    %52 = tpu.matmul %51, %21, %cst_34 {dimension_numbers = #tpu.dot_dimension_numbers<[1], [0], [0], [1], [0, 0, 1, 1], [], []>} : vector<16x32xf32>, vector<32x96xf32>, vector<16x96xf32> -> vector<16x96xf32>
    %53 = vector.extract_strided_slice %52 {offsets = [0, 0], sizes = [8, 16], strides = [1, 1]} : vector<16x96xf32> to vector<8x16xf32>
    %54 = vector.extract_strided_slice %52 {offsets = [0, 32], sizes = [8, 16], strides = [1, 1]} : vector<16x96xf32> to vector<8x16xf32>
    %55 = vector.extract_strided_slice %52 {offsets = [0, 64], sizes = [8, 16], strides = [1, 1]} : vector<16x96xf32> to vector<8x16xf32>
    %cst_35 = arith.constant dense<0.000000e+00> : vector<8x8xf32>
    %56 = tpu.matmul %53, %54, %cst_35 {dimension_numbers = #tpu.dot_dimension_numbers<[1], [1], [0], [0], [0, 0, 1, 0], [], []>} : vector<8x16xf32>, vector<8x16xf32>, vector<8x8xf32> -> vector<8x8xf32>
    %cst_36 = arith.constant 0.353553385 : f32
    %57 = vector.broadcast %cst_36 : f32 to vector<8x8xf32>
    %58 = arith.mulf %56, %57 : vector<8x8xf32>
    %cst_37 = arith.constant dense<0xFF800000> : vector<8xf32>
    %59 = vector.multi_reduction <maximumf>, %58, %cst_37 [1] : vector<8x8xf32> to vector<8xf32>
    %60 = vector.shape_cast %59 : vector<8xf32> to vector<8x1xf32>
    %61 = vector.broadcast %60 : vector<8x1xf32> to vector<8x8xf32>
    %62 = arith.subf %58, %61 : vector<8x8xf32>
    %63 = math.exp %62 : vector<8x8xf32>
    %cst_38 = arith.constant dense<0.000000e+00> : vector<8xf32>
    %64 = vector.multi_reduction <add>, %63, %cst_38 [1] : vector<8x8xf32> to vector<8xf32>
    %65 = vector.shape_cast %64 : vector<8xf32> to vector<8x1xf32>
    %66 = tpu.reciprocal %65 {approx = true} : vector<8x1xf32> -> vector<8x1xf32>
    %67 = vector.broadcast %66 : vector<8x1xf32> to vector<8x8xf32>
    %68 = arith.mulf %63, %67 : vector<8x8xf32>
    %cst_39 = arith.constant dense<0.000000e+00> : vector<8x16xf32>
    %69 = tpu.matmul %68, %55, %cst_39 {dimension_numbers = #tpu.dot_dimension_numbers<[1], [0], [0], [1], [0, 0, 1, 1], [], []>} : vector<8x8xf32>, vector<8x16xf32>, vector<8x16xf32> -> vector<8x16xf32>
    %70 = vector.extract_strided_slice %52 {offsets = [0, 16], sizes = [8, 16], strides = [1, 1]} : vector<16x96xf32> to vector<8x16xf32>
    %71 = vector.extract_strided_slice %52 {offsets = [0, 48], sizes = [8, 16], strides = [1, 1]} : vector<16x96xf32> to vector<8x16xf32>
    %72 = vector.extract_strided_slice %52 {offsets = [0, 80], sizes = [8, 16], strides = [1, 1]} : vector<16x96xf32> to vector<8x16xf32>
    %cst_40 = arith.constant dense<0.000000e+00> : vector<8x8xf32>
    %73 = tpu.matmul %70, %71, %cst_40 {dimension_numbers = #tpu.dot_dimension_numbers<[1], [1], [0], [0], [0, 0, 1, 0], [], []>} : vector<8x16xf32>, vector<8x16xf32>, vector<8x8xf32> -> vector<8x8xf32>
    %cst_41 = arith.constant 0.353553385 : f32
    %74 = vector.broadcast %cst_41 : f32 to vector<8x8xf32>
    %75 = arith.mulf %73, %74 : vector<8x8xf32>
    %cst_42 = arith.constant dense<0xFF800000> : vector<8xf32>
    %76 = vector.multi_reduction <maximumf>, %75, %cst_42 [1] : vector<8x8xf32> to vector<8xf32>
    %77 = vector.shape_cast %76 : vector<8xf32> to vector<8x1xf32>
    %78 = vector.broadcast %77 : vector<8x1xf32> to vector<8x8xf32>
    %79 = arith.subf %75, %78 : vector<8x8xf32>
    %80 = math.exp %79 : vector<8x8xf32>
    %cst_43 = arith.constant dense<0.000000e+00> : vector<8xf32>
    %81 = vector.multi_reduction <add>, %80, %cst_43 [1] : vector<8x8xf32> to vector<8xf32>
    %82 = vector.shape_cast %81 : vector<8xf32> to vector<8x1xf32>
    %83 = tpu.reciprocal %82 {approx = true} : vector<8x1xf32> -> vector<8x1xf32>
    %84 = vector.broadcast %83 : vector<8x1xf32> to vector<8x8xf32>
    %85 = arith.mulf %80, %84 : vector<8x8xf32>
    %cst_44 = arith.constant dense<0.000000e+00> : vector<8x16xf32>
    %86 = tpu.matmul %85, %72, %cst_44 {dimension_numbers = #tpu.dot_dimension_numbers<[1], [0], [0], [1], [0, 0, 1, 1], [], []>} : vector<8x8xf32>, vector<8x16xf32>, vector<8x16xf32> -> vector<8x16xf32>
    %87 = tpu.concatenate %69, %86 in 1 : vector<8x16xf32>, vector<8x16xf32> -> vector<8x32xf32>
    %88 = vector.extract_strided_slice %52 {offsets = [8, 0], sizes = [8, 16], strides = [1, 1]} : vector<16x96xf32> to vector<8x16xf32>
    %89 = vector.extract_strided_slice %52 {offsets = [8, 32], sizes = [8, 16], strides = [1, 1]} : vector<16x96xf32> to vector<8x16xf32>
    %90 = vector.extract_strided_slice %52 {offsets = [8, 64], sizes = [8, 16], strides = [1, 1]} : vector<16x96xf32> to vector<8x16xf32>
    %cst_45 = arith.constant dense<0.000000e+00> : vector<8x8xf32>
    %91 = tpu.matmul %88, %89, %cst_45 {dimension_numbers = #tpu.dot_dimension_numbers<[1], [1], [0], [0], [0, 0, 1, 0], [], []>} : vector<8x16xf32>, vector<8x16xf32>, vector<8x8xf32> -> vector<8x8xf32>
    %cst_46 = arith.constant 0.353553385 : f32
    %92 = vector.broadcast %cst_46 : f32 to vector<8x8xf32>
    %93 = arith.mulf %91, %92 : vector<8x8xf32>
    %cst_47 = arith.constant dense<0xFF800000> : vector<8xf32>
    %94 = vector.multi_reduction <maximumf>, %93, %cst_47 [1] : vector<8x8xf32> to vector<8xf32>
    %95 = vector.shape_cast %94 : vector<8xf32> to vector<8x1xf32>
    %96 = vector.broadcast %95 : vector<8x1xf32> to vector<8x8xf32>
    %97 = arith.subf %93, %96 : vector<8x8xf32>
    %98 = math.exp %97 : vector<8x8xf32>
    %cst_48 = arith.constant dense<0.000000e+00> : vector<8xf32>
    %99 = vector.multi_reduction <add>, %98, %cst_48 [1] : vector<8x8xf32> to vector<8xf32>
    %100 = vector.shape_cast %99 : vector<8xf32> to vector<8x1xf32>
    %101 = tpu.reciprocal %100 {approx = true} : vector<8x1xf32> -> vector<8x1xf32>
    %102 = vector.broadcast %101 : vector<8x1xf32> to vector<8x8xf32>
    %103 = arith.mulf %98, %102 : vector<8x8xf32>
    %cst_49 = arith.constant dense<0.000000e+00> : vector<8x16xf32>
    %104 = tpu.matmul %103, %90, %cst_49 {dimension_numbers = #tpu.dot_dimension_numbers<[1], [0], [0], [1], [0, 0, 1, 1], [], []>} : vector<8x8xf32>, vector<8x16xf32>, vector<8x16xf32> -> vector<8x16xf32>
    %105 = vector.extract_strided_slice %52 {offsets = [8, 16], sizes = [8, 16], strides = [1, 1]} : vector<16x96xf32> to vector<8x16xf32>
    %106 = vector.extract_strided_slice %52 {offsets = [8, 48], sizes = [8, 16], strides = [1, 1]} : vector<16x96xf32> to vector<8x16xf32>
    %107 = vector.extract_strided_slice %52 {offsets = [8, 80], sizes = [8, 16], strides = [1, 1]} : vector<16x96xf32> to vector<8x16xf32>
    %cst_50 = arith.constant dense<0.000000e+00> : vector<8x8xf32>
    %108 = tpu.matmul %105, %106, %cst_50 {dimension_numbers = #tpu.dot_dimension_numbers<[1], [1], [0], [0], [0, 0, 1, 0], [], []>} : vector<8x16xf32>, vector<8x16xf32>, vector<8x8xf32> -> vector<8x8xf32>
    %cst_51 = arith.constant 0.353553385 : f32
    %109 = vector.broadcast %cst_51 : f32 to vector<8x8xf32>
    %110 = arith.mulf %108, %109 : vector<8x8xf32>
    %cst_52 = arith.constant dense<0xFF800000> : vector<8xf32>
    %111 = vector.multi_reduction <maximumf>, %110, %cst_52 [1] : vector<8x8xf32> to vector<8xf32>
    %112 = vector.shape_cast %111 : vector<8xf32> to vector<8x1xf32>
    %113 = vector.broadcast %112 : vector<8x1xf32> to vector<8x8xf32>
    %114 = arith.subf %110, %113 : vector<8x8xf32>
    %115 = math.exp %114 : vector<8x8xf32>
    %cst_53 = arith.constant dense<0.000000e+00> : vector<8xf32>
    %116 = vector.multi_reduction <add>, %115, %cst_53 [1] : vector<8x8xf32> to vector<8xf32>
    %117 = vector.shape_cast %116 : vector<8xf32> to vector<8x1xf32>
    %118 = tpu.reciprocal %117 {approx = true} : vector<8x1xf32> -> vector<8x1xf32>
    %119 = vector.broadcast %118 : vector<8x1xf32> to vector<8x8xf32>
    %120 = arith.mulf %115, %119 : vector<8x8xf32>
    %cst_54 = arith.constant dense<0.000000e+00> : vector<8x16xf32>
    %121 = tpu.matmul %120, %107, %cst_54 {dimension_numbers = #tpu.dot_dimension_numbers<[1], [0], [0], [1], [0, 0, 1, 1], [], []>} : vector<8x8xf32>, vector<8x16xf32>, vector<8x16xf32> -> vector<8x16xf32>
    %122 = tpu.concatenate %104, %121 in 1 : vector<8x16xf32>, vector<8x16xf32> -> vector<8x32xf32>
    %123 = tpu.concatenate %87, %122 in 0 : vector<8x32xf32>, vector<8x32xf32> -> vector<16x32xf32>
    %cst_55 = arith.constant dense<0.000000e+00> : vector<16x32xf32>
    %124 = tpu.matmul %123, %23, %cst_55 {dimension_numbers = #tpu.dot_dimension_numbers<[1], [0], [0], [1], [0, 0, 1, 1], [], []>} : vector<16x32xf32>, vector<32x32xf32>, vector<16x32xf32> -> vector<16x32xf32>
    %125 = vector.broadcast %9 : vector<1x32xf32> to vector<16x32xf32>
    %126 = arith.addf %124, %125 : vector<16x32xf32>
    %127 = arith.addf %126, %51 : vector<16x32xf32>
    %cst_56 = arith.constant dense<0.000000e+00> : vector<16xf32>
    %128 = vector.multi_reduction <add>, %127, %cst_56 [1] : vector<16x32xf32> to vector<16xf32>
    %129 = vector.shape_cast %128 : vector<16xf32> to vector<16x1xf32>
    %cst_57 = arith.constant 3.200000e+01 : f32
    %130 = vector.broadcast %cst_57 : f32 to vector<16x1xf32>
    %131 = arith.divf %129, %130 : vector<16x1xf32>
    %132 = vector.broadcast %131 : vector<16x1xf32> to vector<16x32xf32>
    %133 = arith.subf %127, %132 : vector<16x32xf32>
    %134 = arith.mulf %133, %133 : vector<16x32xf32>
    %cst_58 = arith.constant dense<0.000000e+00> : vector<16xf32>
    %135 = vector.multi_reduction <add>, %134, %cst_58 [1] : vector<16x32xf32> to vector<16xf32>
    %136 = vector.shape_cast %135 : vector<16xf32> to vector<16x1xf32>
    %cst_59 = arith.constant 3.200000e+01 : f32
    %137 = vector.broadcast %cst_59 : f32 to vector<16x1xf32>
    %138 = arith.divf %136, %137 : vector<16x1xf32>
    %139 = vector.broadcast %131 : vector<16x1xf32> to vector<16x32xf32>
    %140 = arith.subf %127, %139 : vector<16x32xf32>
    %cst_60 = arith.constant 9.99999974E-6 : f32
    %141 = vector.broadcast %cst_60 : f32 to vector<16x1xf32>
    %142 = arith.addf %138, %141 : vector<16x1xf32>
    %143 = math.rsqrt %142 : vector<16x1xf32>
    %144 = vector.broadcast %143 : vector<16x1xf32> to vector<16x32xf32>
    %145 = arith.mulf %140, %144 : vector<16x32xf32>
    %146 = vector.broadcast %11 : vector<1x32xf32> to vector<16x32xf32>
    %147 = arith.mulf %145, %146 : vector<16x32xf32>
    %148 = vector.broadcast %13 : vector<1x32xf32> to vector<16x32xf32>
    %149 = arith.addf %147, %148 : vector<16x32xf32>
    %cst_61 = arith.constant dense<0.000000e+00> : vector<16x128xf32>
    %150 = tpu.matmul %149, %25, %cst_61 {dimension_numbers = #tpu.dot_dimension_numbers<[1], [0], [0], [1], [0, 0, 1, 1], [], []>} : vector<16x32xf32>, vector<32x128xf32>, vector<16x128xf32> -> vector<16x128xf32>
    %151 = vector.broadcast %15 : vector<1x128xf32> to vector<16x128xf32>
    %152 = arith.addf %150, %151 : vector<16x128xf32>
    %cst_62 = arith.constant dense<0.000000e+00> : vector<16x128xf32>
    %153 = tpu.matmul %149, %27, %cst_62 {dimension_numbers = #tpu.dot_dimension_numbers<[1], [0], [0], [1], [0, 0, 1, 1], [], []>} : vector<16x32xf32>, vector<32x128xf32>, vector<16x128xf32> -> vector<16x128xf32>
    %154 = vector.broadcast %17 : vector<1x128xf32> to vector<16x128xf32>
    %155 = arith.addf %153, %154 : vector<16x128xf32>
    %cst_63 = arith.constant 5.000000e-01 : f32
    %156 = vector.broadcast %cst_63 : f32 to vector<16x128xf32>
    %157 = arith.mulf %156, %155 : vector<16x128xf32>
    %cst_64 = arith.constant 0.707106769 : f32
    %158 = vector.broadcast %cst_64 : f32 to vector<16x128xf32>
    %159 = arith.mulf %155, %158 : vector<16x128xf32>
    %160 = math.erf %159 : vector<16x128xf32>
    %cst_65 = arith.constant 1.000000e+00 : f32
    %161 = vector.broadcast %cst_65 : f32 to vector<16x128xf32>
    %162 = arith.addf %161, %160 : vector<16x128xf32>
    %163 = arith.mulf %157, %162 : vector<16x128xf32>
    %164 = arith.mulf %152, %163 : vector<16x128xf32>
    %cst_66 = arith.constant dense<0.000000e+00> : vector<16x32xf32>
    %165 = tpu.matmul %164, %29, %cst_66 {dimension_numbers = #tpu.dot_dimension_numbers<[1], [0], [0], [1], [0, 0, 1, 1], [], []>} : vector<16x128xf32>, vector<128x32xf32>, vector<16x32xf32> -> vector<16x32xf32>
    %166 = vector.broadcast %19 : vector<1x32xf32> to vector<16x32xf32>
    %167 = arith.addf %165, %166 : vector<16x32xf32>
    %168 = arith.addf %167, %149 : vector<16x32xf32>
    %c0_67 = arith.constant 0 : index
    %c0_68 = arith.constant 0 : index
    %169 = vector.load %arg5[%c0_67, %c0_68] : memref<16x32xf32, #tpu.memory_space<vmem>>, vector<16x32xf32>
    tpu.vector_store %arg5[%c0_67, %c0_68], %168 {strides = array<i32>} : memref<16x32xf32, #tpu.memory_space<vmem>>, vector<16x32xf32>,
    %c0_69 = arith.constant 0 : index
    %c0_70 = arith.constant 0 : index
    %170 = vector.load %arg4[%c0_69, %c0_70] : memref<16x32xf32, #tpu.memory_space<vmem>>, vector<16x32xf32>
    tpu.vector_store %arg4[%c0_69, %c0_70], %168 {strides = array<i32>} : memref<16x32xf32, #tpu.memory_space<vmem>>, vector<16x32xf32>,
    return
  }
  func.func @transform_0(%arg0: i32) -> (i32, i32) {
    %c0_i32 = arith.constant 0 : i32
    %c0_i32_0 = arith.constant 0 : i32
    %c0_i32_1 = arith.constant 0 : i32
    return %c0_i32, %c0_i32_0 : i32, i32
  }
  func.func @transform_1(%arg0: i32) -> (i32, i32, i32) {
    %c0_i32 = arith.constant 0 : i32
    %c0_i32_0 = arith.constant 0 : i32
    %c0_i32_1 = arith.constant 0 : i32
    return %arg0, %c0_i32, %c0_i32_0 : i32, i32, i32
  }
  func.func @transform_2(%arg0: i32) -> (i32, i32, i32) {
    %c0_i32 = arith.constant 0 : i32
    %c0_i32_0 = arith.constant 0 : i32
    %c0_i32_1 = arith.constant 0 : i32
    return %arg0, %c0_i32, %c0_i32_0 : i32, i32, i32
  }
  func.func @transform_3(%arg0: i32) -> (i32, i32) {
    %c0_i32 = arith.constant 0 : i32
    %c0_i32_0 = arith.constant 0 : i32
    %c0_i32_1 = arith.constant 0 : i32
    return %c0_i32, %c0_i32_0 : i32, i32
  }
}

</mosaic_0001>

<bundles_post_ra>
// kernel: tpu_custom_call.1
= control target key start
LH: loop header
LB: loop body
LE: loop exit
PB: predicated region body
PF: predicated region fallthrough
CT: control target
= control target key end

     0   :  { %8 = vsyncpa [#allocation4], 0  ;;  %s2385_s0 = inlined_call_operand.hbm [shape: f32[16,32], index: 0, kind: input, shape index: {}]   ;;  %s2386_s1 = inlined_call_operand.hbm [shape: f32[2,256,128], index: 1, kind: input, shape index: {}]   ;;  %s2387_s2 = inlined_call_operand.hbm [shape: f32[2,8,128], index: 2, kind: input, shape index: {}]   ;;  %s2388_s3 = inlined_call_operand.hbm [shape: f32[16,32], index: 3, kind: output, shape index: {}]  }
   0x1   :  { %9 = vsyncpa [#allocation7], 0 }
   0x2   :  { %11 = vsyncpa [#allocation7 + $0x1], 0 }
   0x3   :  { %12 = vsyncpa [#allocation5], 0  ;;  %s2061_s12 = smov 0   ;;  %s2063_s13 = smov 0  }
   0x4   :  { %s2065_s14 = smov 0   ;;  %s2067_s15 = smov 0  }
   0x5 LB: > { %s2082_s16 = sadd.s32 1, %s2023_s15   ;;  %s46_s17 = sadd.s32 1, %s2019_s14  ;;  %s2023_s15 = sphi %s2067_s15, %s2404_s15   ;;  %s2019_s14 = sphi %s2065_s14, %s2403_s14   ;;  %s2015_s13 = sphi %s2063_s13, %s2402_s13   ;;  %s2011_s12 = sphi %s2061_s12, %s2401_s12  }
   0x6   : > { %s43_s18 = ssub.s32 %s2023_s15, %s2082_s16  ;;  %p53_p0 = scmp.ne.s32.totalorder %s2019_s14, %s2015_s13 }
   0x7   : > { %p44_p1 = scmp.eq.s32.totalorder %s43_s18, 0  ;;  %p54_p2 = scmp.eq.s32.totalorder %s2023_s15, 0 }
   0x8   : > { %p1797_p4 = scmp.lt.s32.totalorder %s2023_s15, 2  ;;  %s143_s20 = sand.u32 1, %s2023_s15  }
   0x9   : > { %s2091_s19 = scalar_select %p44_p1, %s2019_s14, %s46_s17  }
   0xa   : > { %p55_p3 = por %p54_p2, %p53_p0  ;;  %s145_s21 = sand.u32 1, %s2019_s14  }
   0xb   : > { %s1553_s22 = sshll.u32 %s145_s21, 8  ;;  %s1595_s23 = sshll.u32 %s2023_s15, 12 }
   0xc   : > { %s2102_s26 = scalar_lea.hbm %s2386_s1, %s1595_s23  ;;  %s147_s27 = scalar_lea.vmem [#allocation6], %s1553_s22 }
   0xd   : > { %s154_s28 = sshll.u32 %s147_s27, 4  ;;  %p2104_p5 = pnand %p1797_p4, %p55_p3  ;;  %s2108_s28 = int_to_ptr.vmem [resolvable:$true] %s154_s28 }
   0xe   : > { %s2110_s30 = scalar_lea.sflag [#allocation7], %s143_s20  ;;  %s1875_s4 = scalar_lea.hbm %s2102_s26, 4096 }
   0xf   : > { %p1876_p6 = scmp.ne.s32.totalorder %s2102_s26, %s1875_s4  ;;  %p2389_p7 = pneg %p2104_p5 }
  0x10   : > { %s1880_s7 = scalar_lea.hbm %s2386_s1, 8192  ;;  %p1881_p10 = scmp.lt.s32.totalorder %s2102_s26, %s2386_s1 }
  0x11   : > { %p1878_p8 = pnand %p2389_p7, %p1876_p6  ;;  %p1882_p11 = scmp.lt.s32.totalorder %s1880_s7, %s1875_s4 }
  0x13   : > { %p1879_p9 = pneg %p1878_p8  ;;  %p1883_p12 = por %p1882_p11, %p1881_p10 }
  0x15   : > { %p1884_p13 = pnand %p1883_p12, %p1879_p9 }
  0x17   : > { %1887 = shalt.err (!%p1884_p13)
}
  0x18   : > { %s1888_s10 = scalar_lea.vmem %s2108_s28, 4096  ;;  %s2025_s11 = smov [#allocation6]  }
  0x19   : > { %p1889_p0 = scmp.ne.s32.totalorder %s2108_s28, %s1888_s10  ;;  %s1893_s17 = sshll.u32 %s2025_s11, 4  ;;  %s1894_s17 = int_to_ptr.vmem [resolvable:$false] %s1893_s17 }
  0x1a   : > { %s1895_s18 = scalar_lea.vmem %s1894_s17, 8192  ;;  %p1896_p3 = scmp.lt.s32.totalorder %s2108_s28, %s1894_s17 }
  0x1b   : > { %p1891_p1 = pnand %p1889_p0, %p2389_p7  ;;  %p1897_p4 = scmp.lt.s32.totalorder %s1895_s18, %s1888_s10 }
  0x1d   : > { %p1892_p2 = pneg %p1891_p1  ;;  %p1898_p6 = por %p1897_p4, %p1896_p3 }
  0x1f   : > { %p1899_p8 = pnand %p1898_p6, %p1892_p2 }
  0x21   : > { %1902 = shalt.err (!%p1899_p8)
}
  0x22   : > { %s2026_s20 = smov 128   ;;  %s2027_s22 = smov 8  }
  0x23   : > { %1792 = dma.hbm_to_vmem [thread:$0]  (!%p2104_p5), %s2102_s26, 4096, %s2108_s28, %s2110_s30, %s2026_s20, %s2026_s20, %s2027_s22  }
  0x24   : > { %s2141_s23 = sadd.s32 4294967295, %s2023_s15   ;;  %p59_p9 = scmp.ne.s32.totalorder %s2015_s13, %s2011_s12 }
  0x25   : > { %p2390_p10 = scmp.eq.s32.totalorder %s2141_s23, 0  ;;  %p1550_p11 = scmp.ge.s32.totalorder %s2023_s15, 1 }
  0x26   : > { %p117_p12 = scmp.lt.s32.totalorder %s2023_s15, 3  ;;  %s2028_s26 = smov [#allocation3]  }
  0x27   : > { %p2151_p0 = por %p2390_p10, %p59_p9  ;;  %s129_s27 = sshll.u32 %s2028_s26, 4  ;;  %s130_s27 = int_to_ptr.vmem [resolvable:$true] %s129_s27 }
  0x28   : > { %p2155_p1 = pnand %p1550_p11, %p117_p12  ;;  %s1556_s28 = sshll.u32 %s145_s21, 3 }
  0x29   : > { %s2393_s24 = scalar_select %p2151_p0, 1, 0 }
  0x2a   : > { %p1785_p2 = pneg %p2155_p1  ;;  %s1557_s12 = sshll.u32 %s2023_s15, 7 }
  0x2b   : > { %s168_s4 = scalar_lea.vmem [#allocation8], %s1556_s28  ;;  %s2169_s8 = scalar_lea.hbm %s2387_s2, %s1557_s12 }
  0x2c   : > { %s175_s5 = sshll.u32 %s168_s4, 4  ;;  %p1786_p3 = pnand %p1785_p2, %p2390_p10  ;;  %s2171_s5 = int_to_ptr.vmem [resolvable:$true] %s175_s5 }
  0x2d   : > { %s1914_s9 = scalar_lea.vmem %s130_s27, 256  ;;  %p1922_p11 = scmp.lt.s32.totalorder %s130_s27, %s130_s27 }
  0x2e   : > { %p1905_p4 = pneg %p1786_p3  ;;  %p1915_p6 = scmp.ne.s32.totalorder %s130_s27, %s1914_s9 }
  0x2f   : > { %p1923_p12 = scmp.lt.s32.totalorder %s1914_s9, %s1914_s9 }
  0x30   : > { %p1917_p8 = pnand %p1915_p6, %p1905_p4 }
  0x31   : > { %p1924_p13 = por %p1923_p12, %p1922_p11 }
  0x32   : > { %p1918_p9 = pneg %p1917_p8 }
  0x34   : > { %p1925_p7 = pnand %p1924_p13, %p1918_p9 }
  0x36   : > { %1928 = shalt.err (!%p1925_p7)
}
  0x37   : > { %1788 = dma.hbm_to_vmem [thread:$0]  (!%p1786_p3), %s2385_s0, 256, %s130_s27, [#allocation4], %s2026_s20, %s2026_s20, %s2027_s22  }
  0x38   : > { %s1929_s10 = scalar_lea.hbm %s2169_s8, 128  ;;  %p2395_p4 = pneg %p2104_p5 }
  0x39   : > { %p1930_p2 = scmp.ne.s32.totalorder %s2169_s8, %s1929_s10  ;;  %s1934_s18 = scalar_lea.hbm %s2387_s2, 256 }
  0x3a   : > { %p1935_p7 = scmp.lt.s32.totalorder %s2169_s8, %s2387_s2  ;;  %p1936_p13 = scmp.lt.s32.totalorder %s1934_s18, %s1929_s10 }
  0x3b   : > { %p1932_p6 = pnand %p1930_p2, %p2395_p4 }
  0x3c   : > { %p1937_p9 = por %p1936_p13, %p1935_p7 }
  0x3d   : > { %p1933_p8 = pneg %p1932_p6 }
  0x3f   : > { %p1938_p11 = pnand %p1937_p9, %p1933_p8 }
  0x41   : > { %1941 = shalt.err (!%p1938_p11)
}
  0x42   : > { %s1942_s20 = scalar_lea.vmem %s2171_s5, 128  ;;  %p2396_p12 = pmov %p2395_p4 }
  0x43   : > { %p1943_p3 = scmp.ne.s32.totalorder %s2171_s5, %s1942_s20  ;;  %s2029_s22 = smov [#allocation8]  }
  0x44   : > { %s1947_s27 = sshll.u32 %s2029_s22, 4  ;;  %s1948_s27 = int_to_ptr.vmem [resolvable:$false] %s1947_s27 }
  0x45   : > { %p1945_p2 = pnand %p1943_p3, %p2396_p12  ;;  %s1949_s12 = scalar_lea.vmem %s1948_s27, 256 }
  0x46   : > { %p1950_p6 = scmp.lt.s32.totalorder %s2171_s5, %s1948_s27  ;;  %p1951_p10 = scmp.lt.s32.totalorder %s1949_s12, %s1942_s20 }
  0x47   : > { %p1946_p4 = pneg %p1945_p2 }
  0x48   : > { %p1952_p0 = por %p1951_p10, %p1950_p6 }
  0x4a   : > { %p1953_p7 = pnand %p1952_p0, %p1946_p4 }
  0x4c   : > { %1956 = shalt.err (!%p1953_p7)
}
  0x4d   : > { %1795 = dma.hbm_to_vmem [thread:$0]  (!%p2104_p5), %s2169_s8, 128, %s2171_s5, %s2110_s30  }
  0x4e   : > { %184 = sbr.rel (%p2155_p1) target bundleno = 2551 (0x9f7), region = 32  ;;  %p2397_p8 = scmp.eq.s32.totalorder (!%p2155_p1), %s2141_s23, 0 }
  0x53   : > { %1998 = dma.done.wait (%p2397_p8), [#allocation4], 256   ;;  %p2398_p13 = pmov %p2397_p8 }
  0x54   : > { %s190_s4 = sand.u32 1, %s2141_s23   ;;  %s192_s6 = sand.u32 1, %s2015_s13  }
  0x55   : > { %2000 = vsyncadd (%p2398_p13), [#allocation4], 4294967040  ;;  %s1560_s7 = sshll.u32 %s192_s6, 8  ;;  %s191_s29 = scalar_lea.sflag [#allocation7], %s190_s4 }
  0x56   : > { %s2210_s9 = scalar_lea.vmem [#allocation6], %s1560_s7  ;;  %p2399_p10 = scmp.ne.s32.totalorder %s2393_s24, 0 }
  0x58   : > { %2002 = dma.done.wait (%p2399_p10), %s191_s29, 4224  }
  0x59   : > { %2004 = vsyncadd (%p2399_p10), %s191_s29, 4294963072  ;;  %s1561_s30 = sshll.u32 %s192_s6, 3  ;;  %p2400_p5 = scmp.ne.s32.totalorder %s2141_s23, 0 }
  0x5a   : > { %s2216_s25 = scalar_lea.vmem [#allocation8], %s1561_s30 }
  0x5b   : > { %229 = sbr.rel (%p2400_p5) target bundleno = 98 (0x62), region = 48 }
  0x60   : > { %v230_v0 = vld [vmem:[#allocation3] sm:$0xff]  ;;  %vm232_vm0 = vcmask 261120   ;;  %v231_v1 = vld [vmem:[#allocation3 + $0x8] sm:$0xff] }
  0x61   : > { %233 = vst.msk [vmem:[#allocation2] sm:$0xff] %vm232_vm0, %v230_v0  ;;  %234 = vst.msk [vmem:[#allocation2 + $0x8] sm:$0xff] %vm232_vm0, %v231_v1 }
  0x62 PF: > { %vm277_vm1 = vcmask 261120   ;;  %v248_v16 = vld [vmem:[%s2210_s9 + $0x18] sm:$0xff]  ;;  %v247_v17 = vld [vmem:[%s2210_s9 + $0x10] sm:$0xff]  ;;  %v246_v18 = vld [vmem:[%s2210_s9 + $0x8] sm:$0xff]  ;;  %v2030_v36 = vmov 0.0   ;;  %vm2031_vm2 = vmmov 0  }
  0x63   : > { %1654 = vmatprep.subr.mxu0 %v248_v16  ;;  %v245_v19 = vld [vmem:[%s2210_s9] sm:$0xff]  ;;  %1670 = vmatprep.subr.mxu1 %v2030_v36  ;;  %s2032_s24 = smov 80   ;;  %s2033_s5 = smov 96   ;;  %vm401_vm3 = vcmask 130048   ;;  %vm477_vm4 = vcmask 64512  }
  0x64   : > { %1655 = vmatpush3.msra.mxu0 %v248_v16  ;;  %v1563_v27 = vld [vmem:[%s2216_s25] ss:$0 sm:$0xff]  ;;  %v1564_v29 = vld [vmem:[%s2216_s25 + $0x1] ss:$0 sm:$0xff]  ;;  %1672 = vmatprep.mubr.msk.f32.mxu1 %vm2031_vm2, %v2030_v36  ;;  %s2034_s8 = smov 112   ;;  %s2035_s15 = smov 48  }
  0x65   : > { %1656 = vmatprep.subr.mxu0 %v247_v17  ;;  %s2036_s21 = smov 64   ;;  %s2037_s10 = smov 16  }
  0x66   : > { %1657 = vmatpush3.msra.mxu0 %v247_v17  ;;  %s2038_s11 = smov [#allocation9]   ;;  %p1799_p0 = scmp.eq.s32.totalorder %s2141_s23, 1 }
  0x67   : > { %1658 = vmatprep.subr.mxu0 %v246_v18  ;;  %s1464_s17 = sshll.u32 %s2038_s11, 4  ;;  %s1465_s17 = int_to_ptr.vmem [resolvable:$true] %s1464_s17 }
  0x68   : > { %v235_v2 = vld [vmem:[#allocation2] sm:$0xff]  ;;  %v236_v3 = vld [vmem:[#allocation2 + $0x8] sm:$0xff]  ;;  %1659 = vmatpush3.msra.mxu0 %v246_v18  ;;  %s1957_s18 = scalar_lea.vmem %s1465_s17, 256  ;;  %p1964_p3 = scmp.lt.s32.totalorder %s1465_s17, %s1465_s17 }
  0x69   : > { %v278_v4 = vsel %vm277_vm1, %v235_v2, 0.0  ;;  %v281_v5 = vsel %vm277_vm1, %v236_v3, 0.0  ;;  %1660 = vmatprep.subr.mxu0 %v245_v19  ;;  %p1958_p1 = scmp.ne.s32.totalorder %s1465_s17, %s1957_s18  ;;  %p1965_p12 = scmp.lt.s32.totalorder %s1957_s18, %s1957_s18 }
  0x6a   : > { %279 = vadd.xlane.f32.xlu0 %v278_v4  ;;  %1661 = vmatpush3.msra.mxu0 %v245_v19 }
  0x6b   : > { %1665 = vmatprep.subr.mxu0 %v2030_v36  ;;  %p1959_p9 = pnand %p1958_p1, %p1799_p0  ;;  %p1966_p2 = por %p1965_p12, %p1964_p3 }
  0x6d   : > { %p1960_p11 = pneg %p1959_p9 }
  0x6e   : > { %282 = vadd.xlane.f32.xlu0 %v281_v5 }
  0x6f   : > { %p1967_p4 = pnand %p1966_p2, %p1960_p11 }
  0xf3   : > { %v280_v6 = vpop.xlane.xlu0 %279 }
  0xf4   : > { %v285_v7 = vmul.f32 0.03125, %v280_v6 }
  0xf6   : > { %v287_v8 = vsub.f32 %v235_v2, %v285_v7 }
  0xf7   : > { %v283_v9 = vpop.xlane.xlu0 %282 }
  0xf8   : > { %v286_v10 = vmul.f32 0.03125, %v283_v9  ;;  %v289_v11 = vmul.f32 %v287_v8, %v287_v8 }
  0xfa   : > { %v288_v12 = vsub.f32 %v236_v3, %v286_v10  ;;  %v291_v13 = vsel %vm277_vm1, %v289_v11, 0.0 }
  0xfb   : > { %292 = vadd.xlane.f32.xlu1 %v291_v13 }
  0xfc   : > { %v290_v14 = vmul.f32 %v288_v12, %v288_v12 }
  0xfe   : > { %v294_v15 = vsel %vm277_vm1, %v290_v14, 0.0 }
  0xff   : > { %295 = vadd.xlane.f32.xlu1 %v294_v15 }
 0x184   : > { %v293_v20 = vpop.xlane.xlu1 %292 }
 0x185   : > { %v297_v21 = vmul.f32 0.03125, %v293_v20 }
 0x187   : > { %v299_v22 = vadd.f32 1e-05, %v297_v21 }
 0x188   : > { %v296_v23 = vpop.xlane.xlu1 %295 }
 0x189   : > { %1847 = vrsqrt.f32 %v299_v22  ;;  %v298_v24 = vmul.f32 0.03125, %v296_v23 }
 0x18b   : > { %v300_v25 = vadd.f32 1e-05, %v298_v24 }
 0x18d   : > { %1849 = vrsqrt.f32 %v300_v25 }
 0x196   : > { %v1848_v26 = vpop.eup %1847 }
 0x197   : > { %v303_v28 = vmul.f32 %v1848_v26, %v287_v8 }
 0x199   : > { %v309_v30 = vmul.f32 %v1563_v27, %v303_v28 }
 0x19a   : > { %v1850_v31 = vpop.eup %1849 }
 0x19b   : > { %v304_v32 = vmul.f32 %v1850_v31, %v288_v12  ;;  %v2230_v33 = vadd.f32 %v1564_v29, %v309_v30 }
 0x19d   : > { %v310_v34 = vmul.f32 %v1563_v27, %v304_v32  ;;  %1662 = vmatprep.mubr.msk.f32.mxu0 %vm277_vm1, %v2230_v33 }
 0x19f   : > { %v2234_v35 = vadd.f32 %v1564_v29, %v310_v34  ;;  %v252_v34 = vld [vmem:[%s2210_s9 + $0x38] sm:$0xff] }
 0x1a1   : > { %1663 = vmatmul.mubr.msk.f32.vlgmr.msra.gmra.mxu0 %vm277_vm1, %v2234_v35 }
 0x1a2   : > { %1667 = vmatprep.mubr.msk.f32.mxu0 %vm2031_vm2, %v2030_v36 }
 0x261   : > { %v2244_v37 = vpop.f32.mrf.mxu0 }
 0x263   : > { %v2246_v38 = vpop.f32.mrf.mxu0 }
 0x264   : > { %567 = vrot.lane.b32.xlu1 %v2246_v38, %s2032_s24  ;;  %399 = vrot.lane.b32.xlu0 %v2246_v38, %s2033_s5 }
 0x268   : > { %565 = vrot.lane.b32.xlu1 %v2246_v38, %s2034_s8  ;;  %903 = vrot.lane.b32.xlu0 %v2244_v37, %s2032_s24 }
 0x26c   : > { %737 = vrot.lane.b32.xlu1 %v2244_v37, %s2033_s5 }
 0x270   : > { %901 = vrot.lane.b32.xlu1 %v2244_v37, %s2034_s8 }
 0x2d6   : > { %v568_v39 = vpop.permute.xlu1 %567  ;;  %v400_v40 = vpop.permute.xlu0 %399 }
 0x2d7   : > { %1666 = vmatpush3.xpose.msk.msra.mxu0 %vm401_vm3, %v400_v40 }
 0x2d8   : > { %1675 = vmatprep.subr.mxu0 %v2030_v36 }
 0x2da   : > { %v566_v41 = vpop.permute.xlu1 %565  ;;  %1668 = vmatmul.mubr.msk.f32.vlgmr.msra.gmra.mxu0 %vm401_vm3, %v2246_v38  ;;  %v904_v43 = vpop.permute.xlu0 %903 }
 0x2db   : > { %1676 = vmatpush3.xpose.msk.msra.mxu0 %vm401_vm3, %v568_v39  ;;  %1677 = vmatprep.mubr.msk.f32.mxu0 %vm2031_vm2, %v2030_v36  ;;  %v249_v39 = vld [vmem:[%s2210_s9 + $0x20] sm:$0xff] }
 0x2dc   : > { %1685 = vmatprep.subr.mxu0 %v2030_v36 }
 0x2de   : > { %v738_v42 = vpop.permute.xlu1 %737  ;;  %1678 = vmatmul.mubr.msk.f32.vlgmr.msra.gmra.mxu0 %vm401_vm3, %v566_v41 }
 0x2df   : > { %1686 = vmatpush3.xpose.msk.msra.mxu0 %vm401_vm3, %v738_v42  ;;  %1687 = vmatprep.mubr.msk.f32.mxu0 %vm2031_vm2, %v2030_v36 }
 0x2e0   : > { %1695 = vmatprep.subr.mxu0 %v2030_v36 }
 0x2e2   : > { %1688 = vmatmul.mubr.msk.f32.vlgmr.msra.gmra.mxu0 %vm401_vm3, %v2244_v37  ;;  %v902_v44 = vpop.permute.xlu1 %901 }
 0x2e3   : > { %1696 = vmatpush3.xpose.msk.msra.mxu0 %vm401_vm3, %v904_v43  ;;  %1697 = vmatprep.mubr.msk.f32.mxu0 %vm2031_vm2, %v2030_v36 }
 0x2e4   : > { %1705 = vmatprep.subr.mxu0 %v252_v34 }
 0x2e6   : > { %1698 = vmatmul.mubr.msk.f32.vlgmr.msra.gmra.mxu0 %vm401_vm3, %v902_v44 }
 0x2e7   : > { %1706 = vmatpush3.msra.mxu0 %v252_v34  ;;  %v271_v34 = vld [vmem:[%s2210_s9 + $0xd0] sm:$0xff] }
 0x39a   : > { %v472_v45 = vpop.f32.mrf.mxu0 }
 0x39b   : > { %v476_v46 = vmul.f32 0.35355338, %v472_v45 }
 0x39c   : > { %v1669_v47 = vpop.f32.mrf.mxu0 }
 0x39d   : > { %v478_v48 = vsel %vm477_vm4, %v476_v46, -inf }
 0x39e   : > { %479 = vmax.xlane.f32.xlu0 %v478_v48  ;;  %v639_v49 = vpop.f32.mrf.mxu0 }
 0x39f   : > { %v643_v50 = vmul.f32 0.35355338, %v639_v49 }
 0x3a0   : > { %v1679_v51 = vpop.f32.mrf.mxu0 }
 0x3a1   : > { %v644_v52 = vsel %vm477_vm4, %v643_v50, -inf  ;;  %v1579_v51 = vld [vmem:[%s2216_s25 + $0x2] ss:$0 sm:$0xff] }
 0x3a2   : > { %645 = vmax.xlane.f32.xlu1 %v644_v52  ;;  %v809_v53 = vpop.f32.mrf.mxu0 }
 0x3a3   : > { %v813_v54 = vmul.f32 0.35355338, %v809_v53 }
 0x3a4   : > { %v1689_v55 = vpop.f32.mrf.mxu0 }
 0x3a5   : > { %v814_v56 = vsel %vm477_vm4, %v813_v54, -inf }
 0x3a6   : > { %815 = vmax.xlane.f32.xlu0 %v814_v56  ;;  %v975_v57 = vpop.f32.mrf.mxu0 }
 0x3a7   : > { %v979_v58 = vmul.f32 0.35355338, %v975_v57 }
 0x3a8   : > { %v1699_v59 = vpop.f32.mrf.mxu0 }
 0x3a9   : > { %v980_v60 = vsel %vm477_vm4, %v979_v58, -inf }
 0x3aa   : > { %981 = vmax.xlane.f32.xlu0 %v980_v60 }
 0x427   : > { %v480_v61 = vpop.xlane.xlu0 %479 }
 0x428   : > { %v481_v62 = vsub.f32 %v476_v46, %v480_v61 }
 0x42a   : > { %v482_v63 = vmul.f32 1.442695, %v481_v62 }
 0x42b   : > { %v646_v0 = vpop.xlane.xlu1 %645 }
 0x42c   : > { %1851 = vpow2.f32 %v482_v63  ;;  %v647_v1 = vsub.f32 %v643_v50, %v646_v0 }
 0x42e   : > { %v648_v2 = vmul.f32 1.442695, %v647_v1 }
 0x42f   : > { %v816_v3 = vpop.xlane.xlu0 %815 }
 0x430   : > { %1853 = vpow2.f32 %v648_v2  ;;  %v817_v4 = vsub.f32 %v813_v54, %v816_v3 }
 0x432   : > { %v818_v5 = vmul.f32 1.442695, %v817_v4  ;;  %v256_v4 = vld [vmem:[%s2210_s9 + $0x58] sm:$0xff] }
 0x433   : > { %v982_v12 = vpop.xlane.xlu0 %981 }
 0x434   : > { %1855 = vpow2.f32 %v818_v5  ;;  %v983_v13 = vsub.f32 %v979_v58, %v982_v12  ;;  %v255_v5 = vld [vmem:[%s2210_s9 + $0x50] sm:$0xff] }
 0x436   : > { %v984_v14 = vmul.f32 1.442695, %v983_v13 }
 0x438   : > { %1857 = vpow2.f32 %v984_v14 }
 0x439   : > { %v1852_v6 = vpop.eup %1851 }
 0x43a   : > { %v484_v7 = vsel %vm477_vm4, %v1852_v6, 0.0 }
 0x43b   : > { %485 = vadd.xlane.f32.xlu0 %v484_v7  ;;  %v253_v7 = vld [vmem:[%s2210_s9 + $0x40] sm:$0xff] }
 0x43d   : > { %v1854_v8 = vpop.eup %1853 }
 0x43e   : > { %v650_v9 = vsel %vm477_vm4, %v1854_v8, 0.0 }
 0x43f   : > { %651 = vadd.xlane.f32.xlu1 %v650_v9 }
 0x441   : > { %v1856_v10 = vpop.eup %1855 }
 0x442   : > { %v820_v11 = vsel %vm477_vm4, %v1856_v10, 0.0 }
 0x443   : > { %821 = vadd.xlane.f32.xlu0 %v820_v11 }
 0x445   : > { %v1858_v15 = vpop.eup %1857 }
 0x446   : > { %v986_v16 = vsel %vm477_vm4, %v1858_v15, 0.0 }
 0x450   : > { %655 = vrot.lane.b32.xlu1 %v2246_v38, %s2035_s15 }
 0x454   : > { %825 = vrot.lane.b32.xlu1 %v2244_v37, %s2036_s21 }
 0x459   : > { %489 = vrot.lane.b32.xlu0 %v2246_v38, %s2036_s21  ;;  %v250_v38 = vld [vmem:[%s2210_s9 + $0x28] sm:$0xff] }
 0x478   : > { %987 = vadd.xlane.f32.xlu1 %v986_v16  ;;  %v1582_v16 = vld [vmem:[%s2216_s25 + $0x3] ss:$0 sm:$0xff] }
 0x489   : > { %991 = vrot.lane.b32.xlu1 %v2244_v37, %s2035_s15  ;;  %v251_v37 = vld [vmem:[%s2210_s9 + $0x30] sm:$0xff] }
 0x48a   : > { %1707 = vmatprep.subr.mxu0 %v251_v37 }
 0x48b   : > { %1708 = vmatpush3.msra.mxu0 %v251_v37  ;;  %v270_v37 = vld [vmem:[%s2210_s9 + $0xc8] sm:$0xff] }
 0x48c   : > { %1709 = vmatprep.subr.mxu0 %v250_v38 }
 0x48d   : > { %1710 = vmatpush3.msra.mxu0 %v250_v38  ;;  %v269_v38 = vld [vmem:[%s2210_s9 + $0xc0] sm:$0xff] }
 0x48e   : > { %1711 = vmatprep.subr.mxu0 %v249_v39 }
 0x48f   : > { %1712 = vmatpush3.msra.mxu0 %v249_v39  ;;  %v268_v39 = vld [vmem:[%s2210_s9 + $0xb8] sm:$0xff] }
 0x490   : > { %1716 = vmatprep.subr.mxu0 %v256_v4 }
 0x4c4   : > { %v486_v17 = vpop.xlane.xlu0 %485 }
 0x4c5   : > { %1859 = vrcp.f32 %v486_v17 }
 0x4c8   : > { %v652_v18 = vpop.xlane.xlu1 %651 }
 0x4c9   : > { %1861 = vrcp.f32 %v652_v18  ;;  %v1583_v18 = vld [vmem:[%s2216_s25 + $0x4] ss:$0 sm:$0xff] }
 0x4cc   : > { %v822_v19 = vpop.xlane.xlu0 %821  ;;  %v656_v22 = vpop.permute.xlu1 %655 }
 0x4cd   : > { %1863 = vrcp.f32 %v822_v19 }
 0x4d0   : > { %v490_v20 = vpop.permute.xlu0 %489  ;;  %v826_v26 = vpop.permute.xlu1 %825 }
 0x4d1   : > { %1671 = vmatpush3.msra.mxu1 %v490_v20 }
 0x4d2   : > { %v1860_v21 = vpop.eup %1859  ;;  %1680 = vmatprep.subr.mxu1 %v2030_v36 }
 0x4d3   : > { %v488_v23 = vmul.f32 %v1860_v21, %v1852_v6  ;;  %v254_v6 = vld [vmem:[%s2210_s9 + $0x48] sm:$0xff] }
 0x4d5   : > { %1673 = vmatmul.mubr.msk.f32.vlgmr.msra.gmra.mxu1 %vm477_vm4, %v488_v23 }
 0x4d6   : > { %v1862_v24 = vpop.eup %1861  ;;  %1681 = vmatpush3.msra.mxu1 %v656_v22  ;;  %1682 = vmatprep.mubr.msk.f32.mxu1 %vm2031_vm2, %v2030_v36 }
 0x4d7   : > { %1690 = vmatprep.subr.mxu1 %v2030_v36  ;;  %v654_v25 = vmul.f32 %v1862_v24, %v1854_v8  ;;  %v260_v8 = vld [vmem:[%s2210_s9 + $0x78] sm:$0xff] }
 0x4d9   : > { %1683 = vmatmul.mubr.msk.f32.vlgmr.msra.gmra.mxu1 %vm477_vm4, %v654_v25  ;;  %v259_v25 = vld [vmem:[%s2210_s9 + $0x70] sm:$0xff] }
 0x4da   : > { %v1864_v27 = vpop.eup %1863  ;;  %1691 = vmatpush3.msra.mxu1 %v826_v26  ;;  %1692 = vmatprep.mubr.msk.f32.mxu1 %vm2031_vm2, %v2030_v36  ;;  %v258_v26 = vld [vmem:[%s2210_s9 + $0x68] sm:$0xff] }
 0x4db   : > { %v824_v28 = vmul.f32 %v1864_v27, %v1856_v10  ;;  %1700 = vmatprep.subr.mxu1 %v2030_v36  ;;  %v257_v27 = vld [vmem:[%s2210_s9 + $0x60] sm:$0xff] }
 0x4dd   : > { %1693 = vmatmul.mubr.msk.f32.vlgmr.msra.gmra.mxu1 %vm477_vm4, %v824_v28  ;;  %v276_v28 = vld [vmem:[%s2210_s9 + $0xf8] sm:$0xff] }
 0x4de   : > { %1702 = vmatprep.mubr.msk.f32.mxu1 %vm2031_vm2, %v2030_v36 }
 0x501   : > { %v988_v29 = vpop.xlane.xlu1 %987 }
 0x502   : > { %1865 = vrcp.f32 %v988_v29  ;;  %v275_v29 = vld [vmem:[%s2210_s9 + $0xf0] sm:$0xff] }
 0x505   : > { %v992_v30 = vpop.permute.xlu1 %991 }
 0x506   : > { %1701 = vmatpush3.msra.mxu1 %v992_v30  ;;  %v274_v30 = vld [vmem:[%s2210_s9 + $0xe8] sm:$0xff] }
 0x507   : > { %1738 = vmatprep.subr.mxu1 %v276_v28 }
 0x50f   : > { %v1866_v31 = vpop.eup %1865 }
 0x510   : > { %v990_v32 = vmul.f32 %v1866_v31, %v1858_v15  ;;  %v273_v31 = vld [vmem:[%s2210_s9 + $0xe0] sm:$0xff] }
 0x512   : > { %1703 = vmatmul.mubr.msk.f32.vlgmr.msra.gmra.mxu1 %vm477_vm4, %v990_v32  ;;  %v272_v32 = vld [vmem:[%s2210_s9 + $0xd8] sm:$0xff] }
 0x513   : > { %1739 = vmatpush3.msra.mxu1 %v276_v28 }
 0x514   : > { %1740 = vmatprep.subr.mxu1 %v275_v29 }
 0x515   : > { %1741 = vmatpush3.msra.mxu1 %v275_v29 }
 0x516   : > { %1742 = vmatprep.subr.mxu1 %v274_v30 }
 0x517   : > { %1743 = vmatpush3.msra.mxu1 %v274_v30 }
 0x518   : > { %1744 = vmatprep.subr.mxu1 %v273_v31 }
 0x519   : > { %1745 = vmatpush3.msra.mxu1 %v273_v31 }
 0x51a   : > { %1746 = vmatprep.subr.mxu1 %v272_v32 }
 0x51b   : > { %1747 = vmatpush3.msra.mxu1 %v272_v32 }
 0x51c   : > { %1748 = vmatprep.subr.mxu1 %v271_v34 }
 0x51d   : > { %1749 = vmatpush3.msra.mxu1 %v271_v34 }
 0x51e   : > { %1750 = vmatprep.subr.mxu1 %v270_v37 }
 0x51f   : > { %1751 = vmatpush3.msra.mxu1 %v270_v37 }
 0x520   : > { %1752 = vmatprep.subr.mxu1 %v269_v38 }
 0x521   : > { %1753 = vmatpush3.msra.mxu1 %v269_v38 }
 0x522   : > { %1754 = vmatprep.subr.mxu1 %v268_v39 }
 0x523   : > { %1755 = vmatpush3.msra.mxu1 %v268_v39 }
 0x595   : > { %v561_v40 = vpop.f32.mrf.mxu1 }
 0x597   : > { %v1674_v36 = vpop.f32.mrf.mxu1 }
 0x598   : > { %v266_v36 = vld [vmem:[%s2210_s9 + $0xa8] sm:$0xff] }
 0x599   : > { %v727_v41 = vpop.f32.mrf.mxu1 }
 0x59a   : > { %732 = vrot.lane.b32.xlu0 %v727_v41, %s2037_s10  ;;  %v265_v41 = vld [vmem:[%s2210_s9 + $0xa0] sm:$0xff] }
 0x59b   : > { %v1684_v42 = vpop.f32.mrf.mxu1 }
 0x59c   : > { %v264_v42 = vld [vmem:[%s2210_s9 + $0x98] sm:$0xff] }
 0x59d   : > { %v897_v43 = vpop.f32.mrf.mxu1 }
 0x59f   : > { %v1694_v44 = vpop.f32.mrf.mxu1 }
 0x5a0   : > { %v262_v44 = vld [vmem:[%s2210_s9 + $0x88] sm:$0xff] }
 0x5d2   : > { %v1063_v45 = vpop.f32.mrf.mxu1 }
 0x5d3   : > { %1068 = vrot.lane.b32.xlu1 %v1063_v45, %s2037_s10  ;;  %v261_v45 = vld [vmem:[%s2210_s9 + $0x80] sm:$0xff] }
 0x5d4   : > { %v1704_v46 = vpop.f32.mrf.mxu1 }
 0x60c   : > { %v733_v47 = vpop.permute.xlu0 %732 }
 0x60d   : > { %v735_v48 = vsel %vm401_vm3, %v561_v40, %v733_v47  ;;  %v267_v40 = vld [vmem:[%s2210_s9 + $0xb0] sm:$0xff] }
 0x60e   : > { %1713 = vmatprep.mubr.msk.f32.mxu0 %vm277_vm1, %v735_v48  ;;  %1756 = vmatprep.subr.mxu1 %v267_v40  ;;  %v1587_v48 = vld [vmem:[%s2216_s25 + $0x6] ss:$0 sm:$0xff] }
 0x60f   : > { %1757 = vmatpush3.msra.mxu1 %v267_v40 }
 0x610   : > { %1758 = vmatprep.subr.mxu1 %v266_v36 }
 0x611   : > { %1759 = vmatpush3.msra.mxu1 %v266_v36 }
 0x612   : > { %1760 = vmatprep.subr.mxu1 %v265_v41 }
 0x613   : > { %1761 = vmatpush3.msra.mxu1 %v265_v41 }
 0x614   : > { %1762 = vmatprep.subr.mxu1 %v264_v42 }
 0x615   : > { %1763 = vmatpush3.msra.mxu1 %v264_v42 }
 0x645   : > { %v1069_v49 = vpop.permute.xlu1 %1068 }
 0x646   : > { %v1071_v50 = vsel %vm401_vm3, %v897_v43, %v1069_v49  ;;  %v263_v43 = vld [vmem:[%s2210_s9 + $0x90] sm:$0xff] }
 0x647   : > { %1714 = vmatmul.mubr.msk.f32.vlgmr.msra.gmra.mxu0 %vm277_vm1, %v1071_v50  ;;  %1764 = vmatprep.subr.mxu1 %v263_v43 }
 0x648   : > { %1717 = vmatpush3.msra.mxu0 %v256_v4  ;;  %1765 = vmatpush3.msra.mxu1 %v263_v43 }
 0x649   : > { %1718 = vmatprep.subr.mxu0 %v255_v5  ;;  %1766 = vmatprep.subr.mxu1 %v262_v44 }
 0x64a   : > { %1719 = vmatpush3.msra.mxu0 %v255_v5  ;;  %1767 = vmatpush3.msra.mxu1 %v262_v44 }
 0x64b   : > { %1720 = vmatprep.subr.mxu0 %v254_v6  ;;  %1768 = vmatprep.subr.mxu1 %v261_v45 }
 0x64c   : > { %1721 = vmatpush3.msra.mxu0 %v254_v6  ;;  %1769 = vmatpush3.msra.mxu1 %v261_v45 }
 0x64d   : > { %1722 = vmatprep.subr.mxu0 %v253_v7 }
 0x64e   : > { %1723 = vmatpush3.msra.mxu0 %v253_v7 }
 0x64f   : > { %1727 = vmatprep.subr.mxu0 %v260_v8 }
 0x707   : > { %v1715_v52 = vpop.f32.mrf.mxu0 }
 0x708   : > { %v1154_v53 = vadd.f32 %v1715_v52, %v1579_v51 }
 0x709   : > { %v1148_v54 = vpop.f32.mrf.mxu0 }
 0x70a   : > { %v1149_v55 = vadd.f32 %v1579_v51, %v1148_v54  ;;  %v1158_v56 = vadd.f32 %v1154_v53, %v2234_v35 }
 0x70c   : > { %v1162_v57 = vsel %vm277_vm1, %v1158_v56, 0.0  ;;  %v1157_v58 = vadd.f32 %v1149_v55, %v2230_v33 }
 0x70d   : > { %1163 = vadd.xlane.f32.xlu1 %v1162_v57 }
 0x70e   : > { %v1159_v59 = vsel %vm277_vm1, %v1157_v58, 0.0 }
 0x70f   : > { %1160 = vadd.xlane.f32.xlu0 %v1159_v59  ;;  %v1584_v59 = vld [vmem:[%s2216_s25 + $0x5] ss:$0 sm:$0xff] }
 0x796   : > { %v1164_v60 = vpop.xlane.xlu1 %1163 }
 0x797   : > { %v1166_v61 = vmul.f32 0.03125, %v1164_v60 }
 0x798   : > { %v1161_v62 = vpop.xlane.xlu0 %1160 }
 0x799   : > { %v1165_v63 = vmul.f32 0.03125, %v1161_v62  ;;  %v1168_v0 = vsub.f32 %v1158_v56, %v1166_v61 }
 0x79b   : > { %v1167_v1 = vsub.f32 %v1157_v58, %v1165_v63  ;;  %v1170_v3 = vmul.f32 %v1168_v0, %v1168_v0 }
 0x79d   : > { %v1169_v2 = vmul.f32 %v1167_v1, %v1167_v1  ;;  %v1174_v33 = vsel %vm277_vm1, %v1170_v3, 0.0  ;;  %v1590_v3 = vld [vmem:[%s2216_s25 + $0x7] ss:$0 sm:$0xff] }
 0x79f   : > { %v1171_v35 = vsel %vm277_vm1, %v1169_v2, 0.0 }
 0x7a0   : > { %1172 = vadd.xlane.f32.xlu0 %v1171_v35 }
 0x7a4   : > { %1175 = vadd.xlane.f32.xlu0 %v1174_v33 }
 0x829   : > { %v1173_v9 = vpop.xlane.xlu0 %1172 }
 0x82a   : > { %v1177_v10 = vmul.f32 0.03125, %v1173_v9 }
 0x82c   : > { %v1179_v11 = vadd.f32 1e-05, %v1177_v10 }
 0x82d   : > { %v1176_v12 = vpop.xlane.xlu0 %1175 }
 0x82e   : > { %1867 = vrsqrt.f32 %v1179_v11  ;;  %v1178_v13 = vmul.f32 0.03125, %v1176_v12 }
 0x830   : > { %v1180_v14 = vadd.f32 1e-05, %v1178_v13 }
 0x832   : > { %1869 = vrsqrt.f32 %v1180_v14 }
 0x83b   : > { %v1868_v15 = vpop.eup %1867 }
 0x83c   : > { %v1183_v17 = vmul.f32 %v1868_v15, %v1167_v1 }
 0x83e   : > { %v1189_v19 = vmul.f32 %v1582_v16, %v1183_v17 }
 0x83f   : > { %v1870_v20 = vpop.eup %1869 }
 0x840   : > { %v1184_v21 = vmul.f32 %v1870_v20, %v1168_v0  ;;  %v2320_v22 = vadd.f32 %v1583_v18, %v1189_v19 }
 0x842   : > { %v1190_v23 = vmul.f32 %v1582_v16, %v1184_v21  ;;  %1724 = vmatprep.mubr.msk.f32.mxu0 %vm277_vm1, %v2320_v22 }
 0x844   : > { %v2324_v24 = vadd.f32 %v1583_v18, %v1190_v23 }
 0x846   : > { %1725 = vmatmul.mubr.msk.f32.vlgmr.msra.gmra.mxu0 %vm277_vm1, %v2324_v24 }
 0x847   : > { %1728 = vmatpush3.msra.mxu0 %v260_v8  ;;  %1735 = vmatprep.mubr.msk.f32.mxu0 %vm277_vm1, %v2320_v22 }
 0x848   : > { %1729 = vmatprep.subr.mxu0 %v259_v25 }
 0x849   : > { %1730 = vmatpush3.msra.mxu0 %v259_v25 }
 0x84a   : > { %1731 = vmatprep.subr.mxu0 %v258_v26 }
 0x84b   : > { %1732 = vmatpush3.msra.mxu0 %v258_v26 }
 0x84c   : > { %1733 = vmatprep.subr.mxu0 %v257_v27 }
 0x84d   : > { %1734 = vmatpush3.msra.mxu0 %v257_v27 }
 0x84e   : > { %1736 = vmatmul.mubr.msk.f32.vlgmr.msra.gmra.mxu0 %vm277_vm1, %v2324_v24 }
 0x906   : > { %v1726_v46 = vpop.f32.mrf.mxu0 }
 0x907   : > { %v1279_v1 = vadd.f32 %v1726_v46, %v1584_v59 }
 0x908   : > { %v1273_v47 = vpop.f32.mrf.mxu0 }
 0x909   : > { %v1274_v63 = vadd.f32 %v1584_v59, %v1273_v47 }
 0x90e   : > { %v1737_v49 = vpop.f32.mrf.mxu0 }
 0x90f   : > { %v1358_v50 = vadd.f32 %v1737_v49, %v1587_v48 }
 0x910   : > { %v1352_v51 = vpop.f32.mrf.mxu0 }
 0x911   : > { %v1364_v52 = vmul.f32 0.70710677, %v1358_v50  ;;  %v1353_v53 = vadd.f32 %v1587_v48, %v1352_v51  ;;  %v1362_v58 = vmul.f32 0.5, %v1358_v50 }
 0x913   : > { %1871 = verf.f32 %v1364_v52  ;;  %v1363_v54 = vmul.f32 0.70710677, %v1353_v53  ;;  %v1361_v60 = vmul.f32 0.5, %v1353_v53 }
 0x915   : > { %1873 = verf.f32 %v1363_v54 }
 0x920   : > { %v1872_v55 = vpop.eup %1871 }
 0x921   : > { %v1368_v56 = vadd.f32 1.0, %v1872_v55 }
 0x922   : > { %v1874_v57 = vpop.eup %1873 }
 0x923   : > { %v1367_v61 = vadd.f32 1.0, %v1874_v57  ;;  %v1370_v62 = vmul.f32 %v1368_v56, %v1362_v58 }
 0x925   : > { %v1369_v0 = vmul.f32 %v1367_v61, %v1361_v60  ;;  %v1372_v35 = vmul.f32 %v1370_v62, %v1279_v1 }
 0x927   : > { %v1371_v2 = vmul.f32 %v1369_v0, %v1274_v63 }
 0x929   : > { %1770 = vmatprep.mubr.f32.mxu1 %v1371_v2 }
 0x92a   : > { %1771 = vmatmul.mubr.f32.vlgmr.msra.gmra.mxu1 %v1372_v35 }
 0x9ea   : > { %v1772_v33 = vpop.f32.mrf.mxu1 }
 0x9eb   : > { %v1449_v4 = vadd.f32 %v1772_v33, %v1590_v3 }
 0x9ec   : > { %v1443_v5 = vpop.f32.mrf.mxu1 }
 0x9ed   : > { %v1453_v6 = vadd.f32 %v1449_v4, %v2324_v24  ;;  %v1444_v7 = vadd.f32 %v1590_v3, %v1443_v5 }
 0x9ef   : > { %1455 = vst.msk [vmem:[#allocation2 + $0x8] sm:$0xff] %vm277_vm1, %v1453_v6  ;;  %1457 = vst.msk [vmem:[#allocation9 + $0x8] sm:$0xff] %vm277_vm1, %v1453_v6  ;;  %v1452_v8 = vadd.f32 %v1444_v7, %v2320_v22 }
 0x9f1   : > { %1454 = vst.msk [vmem:[#allocation2] sm:$0xff] %vm277_vm1, %v1452_v8  ;;  %1456 = vst.msk [vmem:[#allocation9] sm:$0xff] %vm277_vm1, %v1452_v8 }
 0x9f2   : > { %1970 = shalt.err (!%p1967_p4)
}
 0x9f3   : > { %s2039_s26 = smov 128   ;;  %s2040_s28 = smov 8  }
 0x9f4   : > { %1782 = dma.vmem_to_hbm [thread:$0]  (%p1799_p0), %s1465_s17, 256, %s2388_s3, [#allocation5], %s2039_s26, %s2039_s26, %s2040_s28  }
 0x9f5   : > { %2006 = dma.done.wait (%p1799_p0), [#allocation5], 256  }
 0x9f6   : > { %2008 = vsyncadd (%p1799_p0), [#allocation5], 4294967040 }
 0x9f7 PF: > { %p15_p6 = scmp.ge.s32.totalorder %s2082_s16, 4   ;;  %s2401_s12 = smov %s2015_s13 }
 0x9f8   : > { %s2402_s13 = smov %s2019_s14  ;;  %s2403_s14 = smov %s2091_s19 }
 0x9f9   : > { %s2404_s15 = smov %s2082_s16  ;;  %17 = sbr.rel (!%p15_p6) target bundleno = 5 (0x5), region = 89 }
 0x9fe   :  { %1480 = vsyncpa [#allocation4], 1 }
 0x9ff   :  { %1482 = vsyncpa [#allocation4 + $0x1], 1 }
 0xa00   :  { %1483 = vsyncpa [#allocation7], 1 }
 0xa01   :  { %1485 = vsyncpa [#allocation7 + $0x1], 1 }
 0xa02   :  { %1486 = vsyncpa [#allocation5], 1 }
 0xa03   :  { %1488 = vsyncpa [#allocation5 + $0x1], 1 }

</bundles_post_ra>
